<compile_context>
chip_gen: v6e
topology: v6e:2x2x1
jax: 0.10.0
libtpu: 0.0.40
codegen_flags: <defaults>
</compile_context>

<pallas_src>
import math

import jax
import jax.numpy as jnp
from jax.experimental import pallas as pl
from jax.experimental.pallas import tpu as pltpu


_LANE = 128
_SUBLANE = 8
_MIB = 1 << 20


def _round_up(a, b):
    return (a + b - 1) // b * b


def _target_block_bytes():
    """Per-ref block-size target, tuned per TPU generation (HBM bandwidth vs
    the ~0.35 us fixed per-grid-step overhead)."""
    try:
        kind = jax.devices()[0].device_kind.lower()
    except Exception:
        return 2 * _MIB
    if "v5 lite" in kind or "v5e" in kind or "v5lite" in kind:
        return 1 * _MIB   # ~0.82 TB/s: 1 MiB/ref is already ~3.7 us of DMA
    if "v6" in kind:
        return 2 * _MIB   # ~1.4 TB/s
    if "v7" in kind or "7x" in kind:
        return 4 * _MIB   # ~3.2 TB/s: need bigger blocks to amortize overhead
    return 2 * _MIB


def _sublane_multiple(itemsize):
    # Packed dtypes tile sublanes in pairs/quads: 8 rows f32, 16 bf16, 32 int8.
    return max(_SUBLANE, (_SUBLANE * 4) // itemsize)


def _choose_row_tile(n_rows, itemsize, target_bytes):
    """Rows (of 128 lanes) per block for the lane-dense path."""
    sub = _sublane_multiple(itemsize)
    max_rows = max(sub, target_bytes // (_LANE * itemsize))
    if n_rows <= max_rows:
        return n_rows
    r = (max_rows // sub) * sub
    # Prefer a tile that divides n_rows exactly (last chunk then isn't a
    # masked boundary block); accept at most a 2x smaller tile for it.
    cand = r
    while cand >= sub and 2 * cand >= r:
        if n_rows % cand == 0:
            return cand
        cand -= sub
    return r


def _choose_lane_tile(n_lanes, itemsize, target_bytes):
    """Lane chunk for the ragged (L % 128 != 0) path.  A (1, t) VMEM tile pads
    to 8 sublanes, so size toward target_bytes of padded VMEM per buffer."""
    if _SUBLANE * _round_up(n_lanes, _LANE) * itemsize <= target_bytes:
        return n_lanes                              # whole sample per step
    max_lanes = max(_LANE, target_bytes // (_SUBLANE * itemsize))
    return (max_lanes // _LANE) * _LANE             # last chunk is boundary


def _mixup_kernel(idx_ref, mixv_ref, x_ref, xperm_ref, o_ref):
    # idx_ref / mixv_ref live in SMEM (scalar prefetch); idx_ref is consumed
    # by the partner index_map, only mix_value is read here.
    lam = mixv_ref[0]
    x = x_ref[...].astype(jnp.float32)
    xp = xperm_ref[...].astype(jnp.float32)
    # torch: x_mix.lerp(x, lam) = x_mix + lam * (x - x_mix)
    o_ref[...] = (xp + lam * (x - xp)).astype(o_ref.dtype)


def mixup_forward(x, mix_index, mix_value):
    """x: (B, ...), mix_index: (B,) int permutation, mix_value: scalar."""
    orig_shape = x.shape
    B = orig_shape[0]
    L = math.prod(orig_shape[1:])

    mix_index = mix_index.astype(jnp.int32)
    mix_value = jnp.asarray(mix_value, dtype=jnp.float32).reshape((1,))

    itemsize = jnp.dtype(x.dtype).itemsize
    target_bytes = _target_block_bytes()

    if L % _LANE == 0:
        # Lane-dense path: each sample is an (R, 128) slab, tiled along rows.
        R = L // _LANE
        x3 = x.reshape(B, R, _LANE)
        r_tile = _choose_row_tile(R, itemsize, target_bytes)
        n_chunks = pl.cdiv(R, r_tile)
        block = (None, r_tile, _LANE)
        block_vmem = _round_up(r_tile, _SUBLANE) * _LANE * itemsize

        def blk_idx(b, c):
            return (b, c, 0)
    else:
        # Ragged path: no pad/slice copies -- view each sample as (1, L) and
        # let Pallas mask the partial trailing lane group.
        x3 = x.reshape(B, 1, L)
        l_tile = _choose_lane_tile(L, itemsize, target_bytes)
        n_chunks = pl.cdiv(L, l_tile)
        block = (None, 1, l_tile)
        block_vmem = _SUBLANE * _round_up(l_tile, _LANE) * itemsize

        def blk_idx(b, c):
            return (b, 0, c)

    # Put the larger parallel extent first so a megacore (v7x) split over the
    # leading grid axis stays balanced even when B is tiny.
    if B >= n_chunks:
        grid = (B, n_chunks)

        def self_map(b, c, idx_ref, mv_ref):
            return blk_idx(b, c)

        def partner_map(b, c, idx_ref, mv_ref):
            return blk_idx(idx_ref[b], c)
    else:
        grid = (n_chunks, B)

        def self_map(c, b, idx_ref, mv_ref):
            return blk_idx(b, c)

        def partner_map(c, b, idx_ref, mv_ref):
            return blk_idx(idx_ref[b], c)

    grid_spec = pltpu.PrefetchScalarGridSpec(
        num_scalar_prefetch=2,
        grid=grid,
        in_specs=[
            # the sample itself
            pl.BlockSpec(block, self_map),
            # its mixup partner: batch index from the prefetched permutation
            # (default double buffering; VMEM spent on bigger tiles instead).
            pl.BlockSpec(block, partner_map),
        ],
        out_specs=pl.BlockSpec(block, self_map),
    )

    # Pipelined VMEM footprint: 3 streams (x, partner, out) x 2 buffers each;
    # raise the scoped-VMEM limit explicitly so large tiles are accepted on
    # every generation (stays well under v7x's 64 MiB physical VMEM).
    footprint = 3 * 2 * block_vmem
    vmem_limit = int(min(48 * _MIB, max(32 * _MIB, footprint + 8 * _MIB)))

    n_elems = B * L
    cost = pl.CostEstimate(
        flops=3 * n_elems,                      # sub, mul, add per element
        transcendentals=0,
        bytes_accessed=3 * n_elems * itemsize,  # x + x_perm read, out write
    )

    out3 = pl.pallas_call(
        _mixup_kernel,
        out_shape=jax.ShapeDtypeStruct(x3.shape, x.dtype),
        grid_spec=grid_spec,
        compiler_params=pltpu.CompilerParams(
            dimension_semantics=("parallel", "parallel"),
            vmem_limit_bytes=vmem_limit,
        ),
        cost_estimate=cost,
    )(mix_index, mix_value, x3, x3)

    return out3.reshape(orig_shape)


if __name__ == "__main__":
    key = jax.random.PRNGKey(0)
    k_x, k_perm, k_beta, k_x2 = jax.random.split(key, 4)

    # MixUp.sample(): permutation + Beta(alpha, alpha), folded so lambda >= 0.5
    # TODO(synk): the Beta/randperm sampling stays host-side (plain JAX RNG),
    # matching the PyTorch module where sample() runs outside forward().
    alpha = 1.0
    B, C, H, W = 2, 4, 16, 16
    x = jax.random.normal(k_x, (B, C, H, W), dtype=jnp.float32)
    mix_index = jax.random.permutation(k_perm, B).astype(jnp.int32)
    lam = jax.random.beta(k_beta, alpha, alpha)
    lam = jnp.maximum(lam, 1.0 - lam)

    out = mixup_forward(x, mix_index, lam)
    out = jax.block_until_ready(out)

    # Pure-JAX reference: lam * x + (1 - lam) * x[mix_index]
    ref = lam * x + (1.0 - lam) * x[mix_index]
    assert out.shape == x.shape and out.dtype == x.dtype
    assert jnp.allclose(out, ref, atol=1e-5, rtol=1e-5)

    # Ragged feature count (L % 128 != 0) exercises the no-pad path.
    x2 = jax.random.normal(k_x2, (B, 3, 5, 7), dtype=jnp.float32)
    out2 = jax.block_until_ready(mixup_forward(x2, mix_index, lam))
    ref2 = lam * x2 + (1.0 - lam) * x2[mix_index]
    assert out2.shape == x2.shape and out2.dtype == x2.dtype
    assert jnp.allclose(out2, ref2, atol=1e-5, rtol=1e-5)

    print("KERNEL_OK")
</pallas_src>

<mosaic_0001>
module attributes {stable_mosaic.version = 11 : i64} {
  func.func @_mixup_kernel(%arg0: i32, %arg1: i32, %arg2: memref<2xi32, #tpu.memory_space<smem>>, %arg3: memref<1xf32, #tpu.memory_space<smem>>, %arg4: memref<1x8x128xf32, #tpu.memory_space<vmem>>, %arg5: memref<1x8x128xf32, #tpu.memory_space<vmem>>, %arg6: memref<1x8x128xf32, #tpu.memory_space<vmem>>) attributes {dimension_semantics = [#tpu.dimension_semantics<parallel>, #tpu.dimension_semantics<parallel>], iteration_bounds = array<i64: 2, 1>, scalar_prefetch = 2 : i64, scratch_operands = 0 : i64, tpu.core_type = #tpu.core_type<tc>, window_params = [{transform_indices = @transform_0, window_bounds = array<i64: 1, 8, 128>}, {transform_indices = @transform_1, window_bounds = array<i64: 1, 8, 128>}, {transform_indices = @transform_2, window_bounds = array<i64: 1, 8, 128>}]} {
    %c0 = arith.constant 0 : index
    %0 = memref.load %arg3[%c0] : memref<1xf32, #tpu.memory_space<smem>>
    %c0_0 = arith.constant 0 : index
    %c0_1 = arith.constant 0 : index
    %c0_2 = arith.constant 0 : index
    %1 = vector.load %arg4[%c0_0, %c0_1, %c0_2] : memref<1x8x128xf32, #tpu.memory_space<vmem>>, vector<1x8x128xf32>
    %2 = vector.shape_cast %1 : vector<1x8x128xf32> to vector<8x128xf32>
    %c0_3 = arith.constant 0 : index
    %c0_4 = arith.constant 0 : index
    %c0_5 = arith.constant 0 : index
    %3 = vector.load %arg5[%c0_3, %c0_4, %c0_5] : memref<1x8x128xf32, #tpu.memory_space<vmem>>, vector<1x8x128xf32>
    %4 = vector.shape_cast %3 : vector<1x8x128xf32> to vector<8x128xf32>
    %5 = arith.subf %2, %4 : vector<8x128xf32>
    %6 = vector.broadcast %0 : f32 to vector<8x128xf32>
    %7 = arith.mulf %6, %5 : vector<8x128xf32>
    %8 = arith.addf %4, %7 : vector<8x128xf32>
    %c0_6 = arith.constant 0 : index
    %c0_7 = arith.constant 0 : index
    %c0_8 = arith.constant 0 : index
    %9 = vector.load %arg6[%c0_6, %c0_7, %c0_8] : memref<1x8x128xf32, #tpu.memory_space<vmem>>, vector<1x8x128xf32>
    %10 = vector.shape_cast %9 : vector<1x8x128xf32> to vector<8x128xf32>
    %11 = vector.shape_cast %8 : vector<8x128xf32> to vector<1x8x128xf32>
    tpu.vector_store %arg6[%c0_6, %c0_7, %c0_8], %11 {strides = array<i32>} : memref<1x8x128xf32, #tpu.memory_space<vmem>>, vector<1x8x128xf32>,
    return
  }
  func.func @transform_0(%arg0: i32, %arg1: i32, %arg2: memref<2xi32, #tpu.memory_space<smem>>, %arg3: memref<1xf32, #tpu.memory_space<smem>>) -> (i32, i32, i32) {
    %c0_i32 = arith.constant 0 : i32
    %c0_i32_0 = arith.constant 0 : i32
    return %arg0, %arg1, %c0_i32 : i32, i32, i32
  }
  func.func @transform_1(%arg0: i32, %arg1: i32, %arg2: memref<2xi32, #tpu.memory_space<smem>>, %arg3: memref<1xf32, #tpu.memory_space<smem>>) -> (i32, i32, i32) {
    %0 = arith.index_cast %arg0 : i32 to index
    %1 = memref.load %arg2[%0] : memref<2xi32, #tpu.memory_space<smem>>
    %c0_i32 = arith.constant 0 : i32
    %c0_i32_0 = arith.constant 0 : i32
    return %1, %arg1, %c0_i32 : i32, i32, i32
  }
  func.func @transform_2(%arg0: i32, %arg1: i32, %arg2: memref<2xi32, #tpu.memory_space<smem>>, %arg3: memref<1xf32, #tpu.memory_space<smem>>) -> (i32, i32, i32) {
    %c0_i32 = arith.constant 0 : i32
    %c0_i32_0 = arith.constant 0 : i32
    return %arg0, %arg1, %c0_i32 : i32, i32, i32
  }
}

</mosaic_0001>

<bundles_post_ra>
// kernel: tpu_custom_call.1
= control target key start
LH: loop header
LB: loop body
LE: loop exit
PB: predicated region body
PF: predicated region fallthrough
CT: control target
= control target key end

     0   :  { %s929_s0 = inlined_call_operand.vmem [shape: s32[2], index: 0, kind: input, shape index: {}]   ;;  %s930_s1 = inlined_call_operand.<no memory space> [shape: f32[1], index: 1, kind: input, shape index: {}]   ;;  %s931_s2 = inlined_call_operand.hbm [shape: f32[2,8,128], index: 2, kind: input, shape index: {}]   ;;  %s932_s3 = inlined_call_operand.hbm [shape: f32[2,8,128], index: 3, kind: input, shape index: {}]   ;;  %s933_s4 = inlined_call_operand.hbm [shape: f32[2,8,128], index: 4, kind: output, shape index: {}]  }
   0x1   :  { %941 = sst [smem:[#allocation20_spill]] %s931_s2  ;;  %s9_s17 = sshll.u32 %s929_s0, 4  ;;  %s10_s17 = int_to_ptr.vmem [resolvable:$true] %s9_s17 }
   0x2   :  { %13 = sst [smem:[#allocation4]] %s930_s1  ;;  %s468_s20 = scalar_lea.vmem %s10_s17, 16 }
   0x3   :  { %p469_p0 = scmp.ne.s32.totalorder %s10_s17, %s468_s20  ;;  %p473_p1 = scmp.lt.s32.totalorder %s10_s17, %s10_s17 }
   0x4   :  { %p474_p2 = scmp.lt.s32.totalorder %s468_s20, %s468_s20 }
   0x6   :  { %p475_p3 = por %p474_p2, %p473_p1 }
   0x8   :  { %p476_p4 = pnand %p475_p3, %p469_p0 }
   0xa   :  { %479 = shalt.err (!%p476_p4)  }
   0xb   :  { %s648_s21 = smov [#allocation3]  }
   0xc   :  { %12 = dma.vmem_to_smem %s10_s17, 16, %s648_s21, [#allocation2] }
   0xd   :  { %598 = dma.done.wait [#allocation2], 16 }
   0xe   :  { %599 = vsyncadd [#allocation2], 4294967280 }
   0xf   :  { %15 = sfence }
  0x10   :  { %16 = vsyncpa [#allocation6], 0 }
  0x11   :  { %18 = vsyncpa [#allocation6 + $0x1], 0 }
  0x12   :  { %19 = vsyncpa [#allocation9], 0 }
  0x13   :  { %21 = vsyncpa [#allocation9 + $0x1], 0 }
  0x14   :  { %22 = vsyncpa [#allocation7], 0 }
  0x15   :  { %24 = vsyncpa [#allocation7 + $0x1], 0  ;;  %s683_s0 = smov 0   ;;  %s685_s1 = smov 0  }
  0x16   :  { %s687_s22 = smov 0   ;;  %s689_s23 = smov 0  }
  0x17   :  { %s691_s24 = smov 0   ;;  %s693_s25 = smov 0  }
  0x18   :  { %s695_s26 = smov 0   ;;  %s697_s27 = smov 0  }
  0x19   :  { %s699_s28 = smov 0  }
  0x1a LB: > { %942 = sst [smem:[#allocation17_spill]] %s642_s27  ;;  %s356_s29 = sadd.s32 4294967295, %s646_s28   ;;  %s646_s28 = sphi %s699_s28, %s30_s28   ;;  %s642_s27 = sphi %s697_s27, %s967_s27   ;;  %s638_s26 = sphi %s695_s26, %s966_s26   ;;  %s634_s25 = sphi %s693_s25, %s973_s25   ;;  %s630_s24 = sphi %s691_s24, %s972_s24   ;;  %s626_s23 = sphi %s689_s23, %s971_s23   ;;  %s622_s22 = sphi %s687_s22, %s970_s22   ;;  %s618_s1 = sphi %s685_s1, %s969_s1   ;;  %s614_s0 = sphi %s683_s0, %s968_s0  }
  0x1b   : > { %s357_s30 = sadd.s32 4294967294, %s646_s28   ;;  %s42_s5 = sadd.s32 1, %s642_s27 }
  0x1c   : > { %s51_s6 = sadd.s32 1, %s634_s25  ;;  %p44_p5 = scmp.ge.s32.totalorder %s42_s5, 2 }
  0x1d   : > { %p58_p6 = scmp.ne.s32.totalorder %s634_s25, %s630_s24  ;;  %p935_p7 = scmp.eq.s32.totalorder %s646_s28, 0 }
  0x1e   : > { %p64_p8 = scmp.ne.s32.totalorder %s630_s24, %s626_s23  ;;  %s975_s5 = smov (%p44_p5, %s42_s5), 0 }
  0x1f   : > { %943 = sst [smem:[#allocation18_spill]] %s975_s5  ;;  %p744_p9 = por %p935_p7, %p58_p6 }
  0x20   : > { %p748_p10 = scmp.eq.s32.totalorder %s356_s29, 0  ;;  %s46_s9 = ssub.s32 %s642_s27, %s975_s5 }
  0x21   : > { %s755_s10 = sld [smem:[#allocation3 + %s642_s27]]  ;;  %p49_p11 = scmp.eq.s32.totalorder %s46_s9, 0 }
  0x22   : > { %p762_p12 = por %p748_p10, %p64_p8  ;;  %s767_s12 = sld [smem:[#allocation3 + %s975_s5]] }
  0x23   : > { %p120_p13 = scmp.eq.s32.totalorder %s356_s29, 1  ;;  %p126_p1 = scmp.eq.s32.totalorder %s357_s30, 1 }
  0x24   : > { %s946_s11 = scalar_select %p762_p12, 1, 0 }
  0x25   : > { %s770_s13 = scalar_select %p49_p11, %s634_s25, %s51_s6  }
  0x26   : > { %p775_p0 = por %p120_p13, %p58_p6  ;;  %p936_p3 = scmp.lt.s32.totalorder %s646_s28, 2 }
  0x27   : > { %947 = sst [smem:[#allocation19_spill]] %s770_s13  ;;  %p784_p4 = por %p126_p1, %p64_p8 }
  0x28   : > { %s948_s14 = scalar_select %p775_p0, 1, 0 }
  0x29   : > { %s949_s15 = scalar_select %p784_p4, 1, 0 }
  0x2a   : > { %s146_s16 = sand.u32 1, %s634_s25   ;;  %s361_s18 = sshll.u32 %s642_s27, 7 }
  0x2b   : > { %s360_s17 = sshll.u32 %s146_s16, 3  ;;  %s950_s2 = sld [smem:[#allocation20_spill]] }
  0x2c   : > { %s150_s29 = scalar_lea.vmem [#allocation5], %s360_s17  ;;  %p797_p5 = pnand %p936_p3, %p744_p9 }
  0x2d   : > { %s158_s6 = sshll.u32 %s150_s29, 4  ;;  %p364_p6 = scmp.ge.s32.totalorder %s646_s28, 1  ;;  %s159_s6 = int_to_ptr.vmem [resolvable:$true] %s158_s6 }
  0x2e   : > { %p183_p8 = scmp.lt.s32.totalorder %s646_s28, 3  ;;  %s147_s9 = scalar_lea.sflag [#allocation6], %s146_s16 }
  0x2f   : > { %p482_p11 = pneg %p797_p5  ;;  %s493_s5 = scalar_lea.vmem %s159_s6, 128 }
  0x30   : > { %p494_p13 = scmp.ne.s32.totalorder %s159_s6, %s493_s5 }
  0x31   : > { %s156_s21 = scalar_lea.hbm %s950_s2, %s361_s18  ;;  %s649_s18 = smov [#allocation5]  }
  0x32   : > { %p496_p1 = pnand %p494_p13, %p482_p11  ;;  %s498_s17 = sshll.u32 %s649_s18, 4  ;;  %s499_s17 = int_to_ptr.vmem [resolvable:$false] %s498_s17 }
  0x33   : > { %s500_s19 = scalar_lea.vmem %s499_s17, 256  ;;  %p501_p7 = scmp.lt.s32.totalorder %s159_s6, %s499_s17 }
  0x34   : > { %p497_p2 = pneg %p496_p1  ;;  %p502_p4 = scmp.lt.s32.totalorder %s500_s19, %s493_s5 }
  0x36   : > { %p503_p9 = por %p502_p4, %p501_p7 }
  0x38   : > { %p504_p3 = pnand %p503_p9, %p497_p2 }
  0x3a   : > { %507 = shalt.err (!%p504_p3)
}
  0x3b   : > { %383 = dma.hbm_to_vmem [thread:$0]  (!%p797_p5), %s156_s21, 128, %s159_s6, %s147_s9  }
  0x3c   : > { %p811_p7 = pnand %p364_p6, %p183_p8  ;;  %s76_s7 = ssub.s32 %s755_s10, %s767_s12 }
  0x3d   : > { %s81_s16 = sadd.s32 1, %s622_s22  ;;  %p79_p2 = scmp.eq.s32.totalorder %s76_s7, 0 }
  0x3e   : > { %s952_s5 = scalar_select %p811_p7, 1, 0 }
  0x3f   : > { %p88_p3 = scmp.ne.s32.totalorder %s622_s22, %s618_s1  ;;  %p94_p4 = scmp.ne.s32.totalorder %s618_s1, %s614_s0 }
  0x40   : > { %s165_s20 = sand.u32 1, %s622_s22   ;;  %p953_p11 = scmp.eq.s32.totalorder %s646_s28, 0 }
  0x41   : > { %s824_s29 = scalar_select %p79_p2, %s622_s22, %s81_s16  }
  0x42   : > { %p90_p13 = por %p88_p3, %p953_p11  ;;  %p830_p1 = por %p94_p4, %p748_p10 }
  0x43   : > { %s362_s6 = sshll.u32 %s165_s20, 3  ;;  %p955_p5 = scmp.lt.s32.totalorder %s646_s28, 2 }
  0x44   : > { %s954_s21 = scalar_select %p830_p1, 1, 0 }
  0x45   : > { %p836_p6 = pnand %p955_p5, %p90_p13  ;;  %p957_p8 = pmov %p955_p5 }
  0x46   : > { %s373_s10 = scalar_select %p90_p13, [#allocation3], [#allocation11] }
  0x47   : > { %s374_s12 = scalar_select %p90_p13, %s642_s27, 0 }
  0x48   : > { %s977_s10 = smov (!%p957_p8, %s373_s10), [#allocation12]  ;;  %p958_p9 = pmov %p955_p5 }
  0x49   : > { %s169_s9 = scalar_lea.vmem [#allocation8], %s362_s6  ;;  %s166_s16 = scalar_lea.sflag [#allocation9], %s165_s20 }
  0x4a   : > { %s979_s12 = smov (!%p958_p9, %s374_s12), 0  ;;  %s178_s8 = sshll.u32 %s169_s9, 4  ;;  %s845_s8 = int_to_ptr.vmem [resolvable:$true] %s178_s8 }
  0x4b   : > { %s170_s0 = sld [smem:[%s977_s10 + %s979_s12]]  ;;  %p510_p2 = pneg %p836_p6 }
  0x4c   : > { %s513_s10 = scalar_lea.hbm %s932_s3, 256 }
  0x51   : > { %s363_s18 = sshll.u32 %s170_s0, 7 }
  0x52   : > { %s176_s7 = scalar_lea.hbm %s932_s3, %s363_s18 }
  0x53   : > { %s508_s2 = scalar_lea.hbm %s176_s7, 128  ;;  %p514_p11 = scmp.lt.s32.totalorder %s176_s7, %s932_s3 }
  0x54   : > { %p509_p10 = scmp.ne.s32.totalorder %s176_s7, %s508_s2  ;;  %p515_p13 = scmp.lt.s32.totalorder %s513_s10, %s508_s2 }
  0x56   : > { %p511_p3 = pnand %p510_p2, %p509_p10  ;;  %p516_p5 = por %p515_p13, %p514_p11 }
  0x58   : > { %p512_p4 = pneg %p511_p3 }
  0x5a   : > { %p517_p8 = pnand %p516_p5, %p512_p4 }
  0x5c   : > { %520 = shalt.err (!%p517_p8)
}
  0x5d   : > { %s521_s20 = scalar_lea.vmem %s845_s8, 128  ;;  %s650_s0 = smov [#allocation8]  }
  0x5e   : > { %p522_p9 = scmp.ne.s32.totalorder %s845_s8, %s521_s20  ;;  %s526_s9 = sshll.u32 %s650_s0, 4  ;;  %s527_s9 = int_to_ptr.vmem [resolvable:$false] %s526_s9 }
  0x5f   : > { %s528_s27 = scalar_lea.vmem %s527_s9, 256  ;;  %p529_p3 = scmp.lt.s32.totalorder %s845_s8, %s527_s9 }
  0x60   : > { %p524_p0 = pnand %p522_p9, %p510_p2  ;;  %p530_p1 = scmp.lt.s32.totalorder %s528_s27, %s521_s20 }
  0x62   : > { %p525_p10 = pneg %p524_p0  ;;  %p531_p12 = por %p530_p1, %p529_p3 }
  0x64   : > { %p532_p7 = pnand %p531_p12, %p525_p10 }
  0x66   : > { %535 = shalt.err (!%p532_p7)
}
  0x67   : > { %388 = dma.hbm_to_vmem [thread:$0]  (!%p836_p6), %s176_s7, 128, %s845_s8, %s166_s16  }
  0x68   : > { %p959_p4 = scmp.ne.s32.totalorder %s952_s5, 0 }
  0x69   : > { %s867_s2 = sand.u32 (!%p959_p4), 1, %s630_s24   ;;  %p960_p0 = scmp.ne.s32.totalorder (!%p959_p4), %s946_s11, 0 }
  0x6a   : > { %187 = sbr.rel (%p959_p4) target bundleno = 141 (0x8d), region = 28  ;;  %s365_s13 = sshll.u32 (!%p959_p4), %s867_s2, 3 }
  0x6b   : > { %s190_s18 = scalar_lea.sflag (!%p959_p4), [#allocation6], %s867_s2  ;;  %s193_s17 = scalar_lea.vmem (!%p959_p4), [#allocation5], %s365_s13 }
  0x6f   : > { %601 = dma.done.wait (%p960_p0), %s190_s18, 128  }
  0x70   : > { %603 = vsyncadd (%p960_p0), %s190_s18, 4294967168  ;;  %s198_s30 = sand.u32 1, %s618_s1   ;;  %p961_p12 = scmp.ne.s32.totalorder %s954_s21, 0 }
  0x71   : > { %s366_s8 = sshll.u32 %s198_s30, 3  ;;  %s199_s5 = scalar_lea.sflag [#allocation9], %s198_s30 }
  0x72   : > { %s202_s19 = scalar_lea.vmem [#allocation8], %s366_s8 }
  0x73   : > { %605 = dma.done.wait (%p961_p12), %s199_s5, 128  }
  0x74   : > { %607 = vsyncadd (%p961_p12), %s199_s5, 4294967168  ;;  %s229_s7 = sld [smem:[#allocation4]]  ;;  %v230_v0 = vld [vmem:[%s193_s17] sm:$0xff]  ;;  %v231_v1 = vld [vmem:[%s202_s19] sm:$0xff]  ;;  %s227_s11 = scalar_lea.vmem [#allocation10], %s365_s13 }
  0x75   : > { %v232_v3 = vsub.f32 %v230_v0, %v231_v1  ;;  %s252_s16 = sshll.u32 %s227_s11, 4  ;;  %s369_s10 = sshll.u32 %s638_s26, 7  ;;  %s253_s16 = int_to_ptr.vmem [resolvable:$true] %s252_s16 }
  0x76   : > { %s250_s20 = scalar_lea.hbm %s933_s4, %s369_s10  ;;  %s238_s21 = scalar_lea.sflag [#allocation7], %s867_s2 }
  0x77   : > { %s536_s0 = scalar_lea.vmem %s253_s16, 128  ;;  %p962_p1 = scmp.ne.s32.totalorder %s948_s14, 0 }
  0x78   : > { %p537_p7 = scmp.ne.s32.totalorder %s253_s16, %s536_s0  ;;  %s651_s9 = smov [#allocation10]  }
  0x79   : > { %s540_s27 = sshll.u32 %s651_s9, 4  ;;  %s541_s27 = int_to_ptr.vmem [resolvable:$false] %s540_s27 }
  0x7a   : > { %v233_v2 = vstv %s229_s7  ;;  %p538_p6 = pnand %p537_p7, %p962_p1  ;;  %s542_s13 = scalar_lea.vmem %s541_s27, 256 }
  0x7b   : > { %v234_v4 = vmul.f32 %v233_v2, %v232_v3  ;;  %p543_p11 = scmp.lt.s32.totalorder %s253_s16, %s541_s27  ;;  %p544_p13 = scmp.lt.s32.totalorder %s542_s13, %s536_s0 }
  0x7c   : > { %p539_p2 = pneg %p538_p6 }
  0x7d   : > { %v235_v5 = vadd.f32 %v234_v4, %v231_v1  ;;  %p545_p5 = por %p544_p13, %p543_p11 }
  0x7f   : > { %236 = vst [vmem:[%s227_s11] sm:$0xff] %v235_v5  ;;  %p546_p8 = pnand %p545_p5, %p539_p2 }
  0x81   : > { %549 = shalt.err (!%p546_p8)
}
  0x82   : > { %s550_s26 = scalar_lea.hbm %s250_s20, 128  ;;  %s554_s17 = scalar_lea.hbm %s933_s4, 256 }
  0x83   : > { %p551_p9 = scmp.ne.s32.totalorder %s250_s20, %s550_s26  ;;  %p555_p4 = scmp.lt.s32.totalorder %s250_s20, %s933_s4 }
  0x84   : > { %p556_p0 = scmp.lt.s32.totalorder %s554_s17, %s550_s26 }
  0x85   : > { %p552_p10 = pnand %p551_p9, %p962_p1 }
  0x86   : > { %p557_p12 = por %p556_p0, %p555_p4 }
  0x87   : > { %p553_p3 = pneg %p552_p10 }
  0x89   : > { %p558_p7 = pnand %p557_p12, %p553_p3 }
  0x8b   : > { %561 = shalt.err (!%p558_p7)
}
  0x8c   : > { %378 = dma.vmem_to_hbm [thread:$0]  (%p962_p1), %s253_s16, 128, %s250_s20, %s238_s21  }
  0x8d PF: > { %s264_s5 = sand.u32 1, %s626_s23   ;;  %p963_p6 = scmp.ne.s32.totalorder %s949_s15, 0 }
  0x8e   : > { %p964_p2 = scmp.ge.s32.totalorder %s646_s28, 2  ;;  %s265_s19 = scalar_lea.sflag [#allocation7], %s264_s5 }
  0x90   : > { %p390_p11 = pnand %p964_p2, %p963_p6 }
  0x92   : > { %p391_p13 = pneg %p390_p11 }
  0x94   : > { %609 = dma.done.wait (%p391_p13), %s265_s19, 128  }
  0x95   : > { %611 = vsyncadd (%p391_p13), %s265_s19, 4294967168  ;;  %s30_s28 = sadd.s32 1, %s646_s28   ;;  %s965_s14 = sld [smem:[#allocation19_spill]] }
  0x96   : > { %p27_p5 = scmp.ge.s32.totalorder %s30_s28, 4   ;;  %s966_s26 = sld [smem:[#allocation17_spill]] }
  0x97   : > { %s967_s27 = sld [smem:[#allocation18_spill]]  ;;  %s968_s0 = smov %s618_s1 }
  0x98   : > { %s969_s1 = smov %s622_s22  ;;  %s970_s22 = smov %s824_s29 }
  0x99   : > { %s971_s23 = smov %s630_s24  ;;  %s972_s24 = smov %s634_s25 }
  0x9a   :  { %29 = sbr.rel (!%p27_p5) target bundleno = 26 (0x1a), region = 86 }
  0x9b   : > { %s973_s25 = smov %s965_s14 }
  0x9f   :  { %270 = vsyncpa [#allocation6], 1 }
  0xa0   :  { %272 = vsyncpa [#allocation6 + $0x1], 1 }
  0xa1   :  { %273 = vsyncpa [#allocation9], 1 }
  0xa2   :  { %275 = vsyncpa [#allocation9 + $0x1], 1 }
  0xa3   :  { %276 = vsyncpa [#allocation7], 1 }
  0xa4   :  { %278 = vsyncpa [#allocation7 + $0x1], 1 }

</bundles_post_ra>
